<compile_context>
chip_gen: v7x
topology: tpu7x:2x2x1
jax: 0.10.0
libtpu: 0.0.40
codegen_flags: <defaults>
</compile_context>

<pallas_src>
import functools

import jax
import jax.numpy as jnp
from jax.experimental import pallas as pl
from jax.experimental.pallas import tpu as pltpu


def _round_up(x, m):
    return ((x + m - 1) // m) * m


def _make_lstm_kernel(t_tile, seq_len, hp, needs_mask, unroll, mxu_dtype):
    """Builds the recurrent kernel body (closes over static config)."""

    def kernel(x_ref, wih_ref, whh_ref, bias_ref, h_out_ref, c_out_ref,
               xproj_scr, h_scr, c_scr):
        # x_ref:    (t_tile, Bp, D)   time-major input chunk
        # wih_ref:  (D, 4*Hp)         input weights, gate-blocked, lane-aligned
        # whh_ref:  (Hp, 4*Hp)        recurrent weights, gate-blocked
        # bias_ref: (1, 4*Hp)         b_ih + b_hh, gate-blocked
        # h_out/c_out: (Bp, Hp)       final states
        # xproj_scr: (t_tile, Bp, 4*Hp) per-tile pre-activations
        # h_scr/c_scr: (Bp, Hp)       state carried across grid steps
        pid = pl.program_id(0)

        @pl.when(pid == 0)
        def _init():
            h_scr[...] = jnp.zeros_like(h_scr)
            c_scr[...] = jnp.zeros_like(c_scr)

        bp = h_scr.shape[0]
        d = x_ref.shape[2]
        gp = whh_ref.shape[1]

        # ---- Fused input projection for the whole time tile ------------------
        # One big, well-utilized MXU matmul: (t_tile*Bp, D) @ (D, 4*Hp).
        # Keeps the (T, B, 4H) pre-activation slab out of HBM entirely.
        x_tile = x_ref[...].reshape(t_tile * bp, d).astype(mxu_dtype)
        wih = wih_ref[...].astype(mxu_dtype)
        xproj = jnp.dot(x_tile, wih, preferred_element_type=jnp.float32)
        xproj = xproj + bias_ref[...]                   # broadcast (1, 4*Hp)
        xproj_scr[...] = xproj.reshape(t_tile, bp, gp)

        whh = whh_ref[...].astype(mxu_dtype)            # resident for the loop
        t_base = pid * t_tile

        def step(t, carry):
            h_prev, c_prev = carry
            # Only truly sequential work: one MXU push per timestep.
            gates = xproj_scr[t] + jnp.dot(
                h_prev.astype(mxu_dtype), whh,
                preferred_element_type=jnp.float32)     # (Bp, 4*Hp)
            # Lane-aligned gate blocks (Hp % 128 == 0) -> static whole-vreg
            # slices.  PyTorch gate order [i, f, g, o].
            i_g = jax.nn.sigmoid(gates[:, 0 * hp:1 * hp])
            f_g = jax.nn.sigmoid(gates[:, 1 * hp:2 * hp])
            g_g = jnp.tanh(gates[:, 2 * hp:3 * hp])
            o_g = jax.nn.sigmoid(gates[:, 3 * hp:4 * hp])
            c_new = f_g * c_prev + i_g * g_g
            h_new = o_g * jnp.tanh(c_new)
            if needs_mask:  # only emitted when T was padded to a tile multiple
                valid = (t_base + t) < seq_len
                h_new = jnp.where(valid, h_new, h_prev)
                c_new = jnp.where(valid, c_new, c_prev)
            return h_new, c_new

        h0 = h_scr[...]
        c0 = c_scr[...]
        h_last, c_last = jax.lax.fori_loop(0, t_tile, step, (h0, c0),
                                           unroll=unroll)
        h_scr[...] = h_last
        c_scr[...] = c_last

        @pl.when(pid == pl.num_programs(0) - 1)
        def _finalize():
            h_out_ref[...] = h_last.astype(h_out_ref.dtype)
            c_out_ref[...] = c_last.astype(c_out_ref.dtype)

    return kernel


def lstm_encoder_forward(x, w_ih, w_hh, b_ih, b_hh, *, t_tile=None,
                         mxu_dtype=jnp.float32):
    """x: (B, T, D) batch_first.  w_ih: (4H, D), w_hh: (4H, H), b_*: (4H,)
    (PyTorch nn.LSTM parameter shapes, gate order i,f,g,o).
    Returns (hidden, cell), each (1, B, H), matching nn.LSTM num_layers=1."""
    B, T, D = x.shape
    H = w_ih.shape[0] // 4

    # ---- TPU-friendly padded layout ------------------------------------------
    Hp = _round_up(H, 128)          # lane-aligned gate blocks
    Gp = 4 * Hp
    Bp = _round_up(max(B, 8), 8)    # fill f32 sublane tile / MXU rows

    if t_tile is None:
        # Largest time tile whose per-tile VMEM (xproj scratch + double-buffered
        # x slice) stays under ~8 MiB: portable across v5e/v6e/v7x budgets.
        per_step_bytes = Bp * (Gp + 2 * D) * 4
        t_tile = int(max(1, min(T, (8 << 20) // max(per_step_bytes, 1))))
    t_tile = int(min(t_tile, T))
    T_pad = _round_up(T, t_tile)
    needs_mask = T_pad != T
    n_chunks = T_pad // t_tile
    unroll = int(min(t_tile, 8))

    # Time-major, batch/time-padded input (pad content is inert / masked).
    x_tm = jnp.transpose(x.astype(jnp.float32), (1, 0, 2))      # (T, B, D)
    x_tm = jnp.pad(x_tm, ((0, T_pad - T), (0, Bp - B), (0, 0)))  # (T_pad, Bp, D)

    # Weights laid out as (in, 4*Hp): each gate in its own lane-aligned 128-wide
    # block; padded rows/cols are zero (padded lanes stay exactly zero in h/c).
    w_ih_g = w_ih.astype(jnp.float32).reshape(4, H, D)
    wih_t = jnp.zeros((4, Hp, D), jnp.float32).at[:, :H, :].set(w_ih_g)
    wih_t = jnp.transpose(wih_t, (2, 0, 1)).reshape(D, Gp)       # (D, 4*Hp)

    w_hh_g = w_hh.astype(jnp.float32).reshape(4, H, H)
    whh_t = jnp.zeros((4, Hp, Hp), jnp.float32).at[:, :H, :H].set(w_hh_g)
    whh_t = jnp.transpose(whh_t, (2, 0, 1)).reshape(Hp, Gp)      # (Hp, 4*Hp)

    b_g = (b_ih + b_hh).astype(jnp.float32).reshape(4, H)
    bias = jnp.zeros((4, Hp), jnp.float32).at[:, :H].set(b_g).reshape(1, Gp)

    kernel = _make_lstm_kernel(t_tile, T, Hp, needs_mask, unroll, mxu_dtype)

    # Explicit VMEM budget (double-buffered inputs + scratch) with headroom.
    est_bytes = (2 * t_tile * Bp * D + 2 * D * Gp + 2 * Hp * Gp + 2 * Gp
                 + 4 * Bp * Hp + t_tile * Bp * Gp + 2 * Bp * Hp) * 4
    vmem_limit = int(min(96 << 20, max(16 << 20, 2 * est_bytes)))

    grid_spec = pltpu.PrefetchScalarGridSpec(
        num_scalar_prefetch=0,
        grid=(n_chunks,),
        in_specs=[
            pl.BlockSpec((t_tile, Bp, D), lambda t: (t, 0, 0)),  # x time chunk
            pl.BlockSpec((D, Gp), lambda t: (0, 0)),             # W_ih^T (resident)
            pl.BlockSpec((Hp, Gp), lambda t: (0, 0)),            # W_hh^T (resident)
            pl.BlockSpec((1, Gp), lambda t: (0, 0)),             # bias
        ],
        out_specs=[
            pl.BlockSpec((Bp, Hp), lambda t: (0, 0)),            # final h
            pl.BlockSpec((Bp, Hp), lambda t: (0, 0)),            # final c
        ],
        scratch_shapes=[
            pltpu.VMEM((t_tile, Bp, Gp), jnp.float32),           # pre-activations
            pltpu.VMEM((Bp, Hp), jnp.float32),                   # h carry
            pltpu.VMEM((Bp, Hp), jnp.float32),                   # c carry
        ],
    )

    h_pad, c_pad = pl.pallas_call(
        kernel,
        out_shape=(
            jax.ShapeDtypeStruct((Bp, Hp), jnp.float32),
            jax.ShapeDtypeStruct((Bp, Hp), jnp.float32),
        ),
        grid_spec=grid_spec,
        compiler_params=pltpu.CompilerParams(
            dimension_semantics=("arbitrary",),   # time axis is a recurrence
            vmem_limit_bytes=vmem_limit,
        ),
    )(x_tm, wih_t, whh_t, bias)

    # nn.LSTM returns (num_layers, B, H).
    return h_pad[None, :B, :H], c_pad[None, :B, :H]


def _lstm_reference(x, w_ih, w_hh, b_ih, b_hh):
    B, T, D = x.shape
    H = w_hh.shape[1]

    def step(carry, x_t):
        h, c = carry
        gates = x_t @ w_ih.T + b_ih + h @ w_hh.T + b_hh
        i = jax.nn.sigmoid(gates[:, 0 * H:1 * H])
        f = jax.nn.sigmoid(gates[:, 1 * H:2 * H])
        g = jnp.tanh(gates[:, 2 * H:3 * H])
        o = jax.nn.sigmoid(gates[:, 3 * H:4 * H])
        c_new = f * c + i * g
        h_new = o * jnp.tanh(c_new)
        return (h_new, c_new), None

    init = (jnp.zeros((B, H), jnp.float32), jnp.zeros((B, H), jnp.float32))
    (h, c), _ = jax.lax.scan(step, init, jnp.transpose(x, (1, 0, 2)))
    return h[None], c[None]


if __name__ == "__main__":
    # Small shapes consistent with the module: batch=2, seq=8, input_dim=16, hidden=32
    B, T, D, H = 2, 8, 16, 32

    key = jax.random.PRNGKey(0)
    kx, kwi, kwh, kbi, kbh = jax.random.split(key, 5)

    x = jax.random.normal(kx, (B, T, D), dtype=jnp.float32)

    # Deterministic synthetic LSTM parameters (PyTorch shapes, gate order i,f,g,o)
    scale = 1.0 / jnp.sqrt(jnp.float32(H))
    w_ih = jax.random.uniform(kwi, (4 * H, D), jnp.float32, -scale, scale)
    w_hh = jax.random.uniform(kwh, (4 * H, H), jnp.float32, -scale, scale)
    b_ih = jax.random.uniform(kbi, (4 * H,), jnp.float32, -scale, scale)
    b_hh = jax.random.uniform(kbh, (4 * H,), jnp.float32, -scale, scale)

    # t_tile=4 -> grid=(2,): exercises the cross-chunk VMEM state carry.
    fwd = jax.jit(functools.partial(lstm_encoder_forward, t_tile=4))
    hidden, cell = fwd(x, w_ih, w_hh, b_ih, b_hh)
    jax.block_until_ready((hidden, cell))

    h_ref, c_ref = _lstm_reference(x, w_ih, w_hh, b_ih, b_hh)
    assert hidden.shape == (1, B, H) and cell.shape == (1, B, H)
    assert jnp.allclose(hidden, h_ref, atol=5e-5, rtol=5e-5)
    assert jnp.allclose(cell, c_ref, atol=5e-5, rtol=5e-5)

    print("KERNEL_OK")
</pallas_src>

<mosaic_0001>
module attributes {stable_mosaic.version = 11 : i64} {
  func.func @kernel(%arg0: i32, %arg1: memref<4x8x16xf32, #tpu.memory_space<vmem>>, %arg2: memref<16x512xf32, #tpu.memory_space<vmem>>, %arg3: memref<128x512xf32, #tpu.memory_space<vmem>>, %arg4: memref<1x512xf32, #tpu.memory_space<vmem>>, %arg5: memref<8x128xf32, #tpu.memory_space<vmem>>, %arg6: memref<8x128xf32, #tpu.memory_space<vmem>>, %arg7: memref<4x8x512xf32, #tpu.memory_space<vmem>>, %arg8: memref<8x128xf32, #tpu.memory_space<vmem>>, %arg9: memref<8x128xf32, #tpu.memory_space<vmem>>) attributes {dimension_semantics = [#tpu.dimension_semantics<arbitrary>], iteration_bounds = array<i64: 2>, scalar_prefetch = 0 : i64, scratch_operands = 3 : i64, tpu.core_type = #tpu.core_type<tc>, window_params = [{transform_indices = @transform_0, window_bounds = array<i64: 4, 8, 16>}, {pipeline_mode = #tpu.pipeline_mode<synchronous>, transform_indices = @transform_1, window_bounds = array<i64: 16, 512>}, {pipeline_mode = #tpu.pipeline_mode<synchronous>, transform_indices = @transform_2, window_bounds = array<i64: 128, 512>}, {pipeline_mode = #tpu.pipeline_mode<synchronous>, transform_indices = @transform_3, window_bounds = array<i64: 1, 512>}, {pipeline_mode = #tpu.pipeline_mode<synchronous>, transform_indices = @transform_4, window_bounds = array<i64: 8, 128>}, {pipeline_mode = #tpu.pipeline_mode<synchronous>, transform_indices = @transform_5, window_bounds = array<i64: 8, 128>}]} {
    %c0_i32 = arith.constant 0 : i32
    %0 = arith.cmpi eq, %arg0, %c0_i32 : i32
    %1 = arith.extui %0 : i1 to i32
    %c0_i32_0 = arith.constant 0 : i32
    %2 = arith.cmpi ne, %1, %c0_i32_0 : i32
    scf.if %2 {
      %cst_47 = arith.constant 0.000000e+00 : f32
      %140 = vector.broadcast %cst_47 : f32 to vector<8x128xf32>
      %c0_48 = arith.constant 0 : index
      %c0_49 = arith.constant 0 : index
      %141 = vector.load %arg8[%c0_48, %c0_49] : memref<8x128xf32, #tpu.memory_space<vmem>>, vector<8x128xf32>
      tpu.vector_store %arg8[%c0_48, %c0_49], %140 {strides = array<i32>} : memref<8x128xf32, #tpu.memory_space<vmem>>, vector<8x128xf32>,
      %cst_50 = arith.constant 0.000000e+00 : f32
      %142 = vector.broadcast %cst_50 : f32 to vector<8x128xf32>
      %c0_51 = arith.constant 0 : index
      %c0_52 = arith.constant 0 : index
      %143 = vector.load %arg9[%c0_51, %c0_52] : memref<8x128xf32, #tpu.memory_space<vmem>>, vector<8x128xf32>
      tpu.vector_store %arg9[%c0_51, %c0_52], %142 {strides = array<i32>} : memref<8x128xf32, #tpu.memory_space<vmem>>, vector<8x128xf32>,
    } else {
    }
    %c0 = arith.constant 0 : index
    %c0_1 = arith.constant 0 : index
    %c0_2 = arith.constant 0 : index
    %3 = vector.load %arg1[%c0, %c0_1, %c0_2] : memref<4x8x16xf32, #tpu.memory_space<vmem>>, vector<4x8x16xf32>
    %4 = vector.shape_cast %3 : vector<4x8x16xf32> to vector<32x16xf32>
    %c0_3 = arith.constant 0 : index
    %c0_4 = arith.constant 0 : index
    %5 = vector.load %arg2[%c0_3, %c0_4] : memref<16x512xf32, #tpu.memory_space<vmem>>, vector<16x512xf32>
    %cst = arith.constant dense<0.000000e+00> : vector<32x512xf32>
    %6 = tpu.matmul %4, %5, %cst {dimension_numbers = #tpu.dot_dimension_numbers<[1], [0], [0], [1], [0, 0, 1, 1], [], []>} : vector<32x16xf32>, vector<16x512xf32>, vector<32x512xf32> -> vector<32x512xf32>
    %c0_5 = arith.constant 0 : index
    %c0_6 = arith.constant 0 : index
    %7 = vector.load %arg4[%c0_5, %c0_6] : memref<1x512xf32, #tpu.memory_space<vmem>>, vector<1x512xf32>
    %8 = vector.broadcast %7 : vector<1x512xf32> to vector<32x512xf32>
    %9 = arith.addf %6, %8 : vector<32x512xf32>
    %10 = vector.shape_cast %9 : vector<32x512xf32> to vector<4x8x512xf32>
    %c0_7 = arith.constant 0 : index
    %c0_8 = arith.constant 0 : index
    %c0_9 = arith.constant 0 : index
    %11 = vector.load %arg7[%c0_7, %c0_8, %c0_9] : memref<4x8x512xf32, #tpu.memory_space<vmem>>, vector<4x8x512xf32>
    tpu.vector_store %arg7[%c0_7, %c0_8, %c0_9], %10 {strides = array<i32>} : memref<4x8x512xf32, #tpu.memory_space<vmem>>, vector<4x8x512xf32>,
    %c0_10 = arith.constant 0 : index
    %c0_11 = arith.constant 0 : index
    %12 = vector.load %arg3[%c0_10, %c0_11] : memref<128x512xf32, #tpu.memory_space<vmem>>, vector<128x512xf32>
    %c0_12 = arith.constant 0 : index
    %c0_13 = arith.constant 0 : index
    %13 = vector.load %arg8[%c0_12, %c0_13] : memref<8x128xf32, #tpu.memory_space<vmem>>, vector<8x128xf32>
    %c0_14 = arith.constant 0 : index
    %c0_15 = arith.constant 0 : index
    %14 = vector.load %arg9[%c0_14, %c0_15] : memref<8x128xf32, #tpu.memory_space<vmem>>, vector<8x128xf32>
    %c0_i32_16 = arith.constant 0 : i32
    %15 = arith.index_cast %c0_i32_16 : i32 to index
    %c0_17 = arith.constant 0 : index
    %c0_18 = arith.constant 0 : index
    %16 = vector.load %arg7[%15, %c0_17, %c0_18] : memref<4x8x512xf32, #tpu.memory_space<vmem>>, vector<1x8x512xf32>
    %17 = vector.shape_cast %16 : vector<1x8x512xf32> to vector<8x512xf32>
    %cst_19 = arith.constant dense<0.000000e+00> : vector<8x512xf32>
    %18 = tpu.matmul %13, %12, %cst_19 {dimension_numbers = #tpu.dot_dimension_numbers<[1], [0], [0], [1], [0, 0, 1, 1], [], []>} : vector<8x128xf32>, vector<128x512xf32>, vector<8x512xf32> -> vector<8x512xf32>
    %19 = arith.addf %17, %18 : vector<8x512xf32>
    %20 = vector.extract_strided_slice %19 {offsets = [0, 0], sizes = [8, 128], strides = [1, 1]} : vector<8x512xf32> to vector<8x128xf32>
    %21 = arith.negf %20 : vector<8x128xf32>
    %22 = math.exp %21 : vector<8x128xf32>
    %cst_20 = arith.constant 1.000000e+00 : f32
    %23 = vector.broadcast %cst_20 : f32 to vector<8x128xf32>
    %24 = arith.addf %23, %22 : vector<8x128xf32>
    %25 = arith.divf %23, %24 : vector<8x128xf32>
    %26 = vector.extract_strided_slice %19 {offsets = [0, 128], sizes = [8, 128], strides = [1, 1]} : vector<8x512xf32> to vector<8x128xf32>
    %27 = arith.negf %26 : vector<8x128xf32>
    %28 = math.exp %27 : vector<8x128xf32>
    %cst_21 = arith.constant 1.000000e+00 : f32
    %29 = vector.broadcast %cst_21 : f32 to vector<8x128xf32>
    %30 = arith.addf %29, %28 : vector<8x128xf32>
    %31 = arith.divf %29, %30 : vector<8x128xf32>
    %32 = vector.extract_strided_slice %19 {offsets = [0, 256], sizes = [8, 128], strides = [1, 1]} : vector<8x512xf32> to vector<8x128xf32>
    %33 = math.tanh %32 : vector<8x128xf32>
    %34 = vector.extract_strided_slice %19 {offsets = [0, 384], sizes = [8, 128], strides = [1, 1]} : vector<8x512xf32> to vector<8x128xf32>
    %35 = arith.negf %34 : vector<8x128xf32>
    %36 = math.exp %35 : vector<8x128xf32>
    %cst_22 = arith.constant 1.000000e+00 : f32
    %37 = vector.broadcast %cst_22 : f32 to vector<8x128xf32>
    %38 = arith.addf %37, %36 : vector<8x128xf32>
    %39 = arith.divf %37, %38 : vector<8x128xf32>
    %40 = arith.mulf %31, %14 : vector<8x128xf32>
    %41 = arith.mulf %25, %33 : vector<8x128xf32>
    %42 = arith.addf %40, %41 : vector<8x128xf32>
    %43 = math.tanh %42 : vector<8x128xf32>
    %44 = arith.mulf %39, %43 : vector<8x128xf32>
    %c1_i32 = arith.constant 1 : i32
    %45 = arith.index_cast %c1_i32 : i32 to index
    %c0_23 = arith.constant 0 : index
    %c0_24 = arith.constant 0 : index
    %46 = vector.load %arg7[%45, %c0_23, %c0_24] : memref<4x8x512xf32, #tpu.memory_space<vmem>>, vector<1x8x512xf32>
    %47 = vector.shape_cast %46 : vector<1x8x512xf32> to vector<8x512xf32>
    %cst_25 = arith.constant dense<0.000000e+00> : vector<8x512xf32>
    %48 = tpu.matmul %44, %12, %cst_25 {dimension_numbers = #tpu.dot_dimension_numbers<[1], [0], [0], [1], [0, 0, 1, 1], [], []>} : vector<8x128xf32>, vector<128x512xf32>, vector<8x512xf32> -> vector<8x512xf32>
    %49 = arith.addf %47, %48 : vector<8x512xf32>
    %50 = vector.extract_strided_slice %49 {offsets = [0, 0], sizes = [8, 128], strides = [1, 1]} : vector<8x512xf32> to vector<8x128xf32>
    %51 = arith.negf %50 : vector<8x128xf32>
    %52 = math.exp %51 : vector<8x128xf32>
    %cst_26 = arith.constant 1.000000e+00 : f32
    %53 = vector.broadcast %cst_26 : f32 to vector<8x128xf32>
    %54 = arith.addf %53, %52 : vector<8x128xf32>
    %55 = arith.divf %53, %54 : vector<8x128xf32>
    %56 = vector.extract_strided_slice %49 {offsets = [0, 128], sizes = [8, 128], strides = [1, 1]} : vector<8x512xf32> to vector<8x128xf32>
    %57 = arith.negf %56 : vector<8x128xf32>
    %58 = math.exp %57 : vector<8x128xf32>
    %cst_27 = arith.constant 1.000000e+00 : f32
    %59 = vector.broadcast %cst_27 : f32 to vector<8x128xf32>
    %60 = arith.addf %59, %58 : vector<8x128xf32>
    %61 = arith.divf %59, %60 : vector<8x128xf32>
    %62 = vector.extract_strided_slice %49 {offsets = [0, 256], sizes = [8, 128], strides = [1, 1]} : vector<8x512xf32> to vector<8x128xf32>
    %63 = math.tanh %62 : vector<8x128xf32>
    %64 = vector.extract_strided_slice %49 {offsets = [0, 384], sizes = [8, 128], strides = [1, 1]} : vector<8x512xf32> to vector<8x128xf32>
    %65 = arith.negf %64 : vector<8x128xf32>
    %66 = math.exp %65 : vector<8x128xf32>
    %cst_28 = arith.constant 1.000000e+00 : f32
    %67 = vector.broadcast %cst_28 : f32 to vector<8x128xf32>
    %68 = arith.addf %67, %66 : vector<8x128xf32>
    %69 = arith.divf %67, %68 : vector<8x128xf32>
    %70 = arith.mulf %61, %42 : vector<8x128xf32>
    %71 = arith.mulf %55, %63 : vector<8x128xf32>
    %72 = arith.addf %70, %71 : vector<8x128xf32>
    %73 = math.tanh %72 : vector<8x128xf32>
    %74 = arith.mulf %69, %73 : vector<8x128xf32>
    %c2_i32 = arith.constant 2 : i32
    %75 = arith.index_cast %c2_i32 : i32 to index
    %c0_29 = arith.constant 0 : index
    %c0_30 = arith.constant 0 : index
    %76 = vector.load %arg7[%75, %c0_29, %c0_30] : memref<4x8x512xf32, #tpu.memory_space<vmem>>, vector<1x8x512xf32>
    %77 = vector.shape_cast %76 : vector<1x8x512xf32> to vector<8x512xf32>
    %cst_31 = arith.constant dense<0.000000e+00> : vector<8x512xf32>
    %78 = tpu.matmul %74, %12, %cst_31 {dimension_numbers = #tpu.dot_dimension_numbers<[1], [0], [0], [1], [0, 0, 1, 1], [], []>} : vector<8x128xf32>, vector<128x512xf32>, vector<8x512xf32> -> vector<8x512xf32>
    %79 = arith.addf %77, %78 : vector<8x512xf32>
    %80 = vector.extract_strided_slice %79 {offsets = [0, 0], sizes = [8, 128], strides = [1, 1]} : vector<8x512xf32> to vector<8x128xf32>
    %81 = arith.negf %80 : vector<8x128xf32>
    %82 = math.exp %81 : vector<8x128xf32>
    %cst_32 = arith.constant 1.000000e+00 : f32
    %83 = vector.broadcast %cst_32 : f32 to vector<8x128xf32>
    %84 = arith.addf %83, %82 : vector<8x128xf32>
    %85 = arith.divf %83, %84 : vector<8x128xf32>
    %86 = vector.extract_strided_slice %79 {offsets = [0, 128], sizes = [8, 128], strides = [1, 1]} : vector<8x512xf32> to vector<8x128xf32>
    %87 = arith.negf %86 : vector<8x128xf32>
    %88 = math.exp %87 : vector<8x128xf32>
    %cst_33 = arith.constant 1.000000e+00 : f32
    %89 = vector.broadcast %cst_33 : f32 to vector<8x128xf32>
    %90 = arith.addf %89, %88 : vector<8x128xf32>
    %91 = arith.divf %89, %90 : vector<8x128xf32>
    %92 = vector.extract_strided_slice %79 {offsets = [0, 256], sizes = [8, 128], strides = [1, 1]} : vector<8x512xf32> to vector<8x128xf32>
    %93 = math.tanh %92 : vector<8x128xf32>
    %94 = vector.extract_strided_slice %79 {offsets = [0, 384], sizes = [8, 128], strides = [1, 1]} : vector<8x512xf32> to vector<8x128xf32>
    %95 = arith.negf %94 : vector<8x128xf32>
    %96 = math.exp %95 : vector<8x128xf32>
    %cst_34 = arith.constant 1.000000e+00 : f32
    %97 = vector.broadcast %cst_34 : f32 to vector<8x128xf32>
    %98 = arith.addf %97, %96 : vector<8x128xf32>
    %99 = arith.divf %97, %98 : vector<8x128xf32>
    %100 = arith.mulf %91, %72 : vector<8x128xf32>
    %101 = arith.mulf %85, %93 : vector<8x128xf32>
    %102 = arith.addf %100, %101 : vector<8x128xf32>
    %103 = math.tanh %102 : vector<8x128xf32>
    %104 = arith.mulf %99, %103 : vector<8x128xf32>
    %c3_i32 = arith.constant 3 : i32
    %105 = arith.index_cast %c3_i32 : i32 to index
    %c0_35 = arith.constant 0 : index
    %c0_36 = arith.constant 0 : index
    %106 = vector.load %arg7[%105, %c0_35, %c0_36] : memref<4x8x512xf32, #tpu.memory_space<vmem>>, vector<1x8x512xf32>
    %107 = vector.shape_cast %106 : vector<1x8x512xf32> to vector<8x512xf32>
    %cst_37 = arith.constant dense<0.000000e+00> : vector<8x512xf32>
    %108 = tpu.matmul %104, %12, %cst_37 {dimension_numbers = #tpu.dot_dimension_numbers<[1], [0], [0], [1], [0, 0, 1, 1], [], []>} : vector<8x128xf32>, vector<128x512xf32>, vector<8x512xf32> -> vector<8x512xf32>
    %109 = arith.addf %107, %108 : vector<8x512xf32>
    %110 = vector.extract_strided_slice %109 {offsets = [0, 0], sizes = [8, 128], strides = [1, 1]} : vector<8x512xf32> to vector<8x128xf32>
    %111 = arith.negf %110 : vector<8x128xf32>
    %112 = math.exp %111 : vector<8x128xf32>
    %cst_38 = arith.constant 1.000000e+00 : f32
    %113 = vector.broadcast %cst_38 : f32 to vector<8x128xf32>
    %114 = arith.addf %113, %112 : vector<8x128xf32>
    %115 = arith.divf %113, %114 : vector<8x128xf32>
    %116 = vector.extract_strided_slice %109 {offsets = [0, 128], sizes = [8, 128], strides = [1, 1]} : vector<8x512xf32> to vector<8x128xf32>
    %117 = arith.negf %116 : vector<8x128xf32>
    %118 = math.exp %117 : vector<8x128xf32>
    %cst_39 = arith.constant 1.000000e+00 : f32
    %119 = vector.broadcast %cst_39 : f32 to vector<8x128xf32>
    %120 = arith.addf %119, %118 : vector<8x128xf32>
    %121 = arith.divf %119, %120 : vector<8x128xf32>
    %122 = vector.extract_strided_slice %109 {offsets = [0, 256], sizes = [8, 128], strides = [1, 1]} : vector<8x512xf32> to vector<8x128xf32>
    %123 = math.tanh %122 : vector<8x128xf32>
    %124 = vector.extract_strided_slice %109 {offsets = [0, 384], sizes = [8, 128], strides = [1, 1]} : vector<8x512xf32> to vector<8x128xf32>
    %125 = arith.negf %124 : vector<8x128xf32>
    %126 = math.exp %125 : vector<8x128xf32>
    %cst_40 = arith.constant 1.000000e+00 : f32
    %127 = vector.broadcast %cst_40 : f32 to vector<8x128xf32>
    %128 = arith.addf %127, %126 : vector<8x128xf32>
    %129 = arith.divf %127, %128 : vector<8x128xf32>
    %130 = arith.mulf %121, %102 : vector<8x128xf32>
    %131 = arith.mulf %115, %123 : vector<8x128xf32>
    %132 = arith.addf %130, %131 : vector<8x128xf32>
    %133 = math.tanh %132 : vector<8x128xf32>
    %134 = arith.mulf %129, %133 : vector<8x128xf32>
    %c4_i32 = arith.constant 4 : i32
    %c0_41 = arith.constant 0 : index
    %c0_42 = arith.constant 0 : index
    %135 = vector.load %arg8[%c0_41, %c0_42] : memref<8x128xf32, #tpu.memory_space<vmem>>, vector<8x128xf32>
    tpu.vector_store %arg8[%c0_41, %c0_42], %134 {strides = array<i32>} : memref<8x128xf32, #tpu.memory_space<vmem>>, vector<8x128xf32>,
    %c0_43 = arith.constant 0 : index
    %c0_44 = arith.constant 0 : index
    %136 = vector.load %arg9[%c0_43, %c0_44] : memref<8x128xf32, #tpu.memory_space<vmem>>, vector<8x128xf32>
    tpu.vector_store %arg9[%c0_43, %c0_44], %132 {strides = array<i32>} : memref<8x128xf32, #tpu.memory_space<vmem>>, vector<8x128xf32>,
    %c1_i32_45 = arith.constant 1 : i32
    %137 = arith.cmpi eq, %arg0, %c1_i32_45 : i32
    %138 = arith.extui %137 : i1 to i32
    %c0_i32_46 = arith.constant 0 : i32
    %139 = arith.cmpi ne, %138, %c0_i32_46 : i32
    scf.if %139 {
      %c0_47 = arith.constant 0 : index
      %c0_48 = arith.constant 0 : index
      %140 = vector.load %arg5[%c0_47, %c0_48] : memref<8x128xf32, #tpu.memory_space<vmem>>, vector<8x128xf32>
      tpu.vector_store %arg5[%c0_47, %c0_48], %134 {strides = array<i32>} : memref<8x128xf32, #tpu.memory_space<vmem>>, vector<8x128xf32>,
      %c0_49 = arith.constant 0 : index
      %c0_50 = arith.constant 0 : index
      %141 = vector.load %arg6[%c0_49, %c0_50] : memref<8x128xf32, #tpu.memory_space<vmem>>, vector<8x128xf32>
      tpu.vector_store %arg6[%c0_49, %c0_50], %132 {strides = array<i32>} : memref<8x128xf32, #tpu.memory_space<vmem>>, vector<8x128xf32>,
    } else {
    }
    return
  }
  func.func @transform_0(%arg0: i32) -> (i32, i32, i32) {
    %c0_i32 = arith.constant 0 : i32
    %c0_i32_0 = arith.constant 0 : i32
    %c0_i32_1 = arith.constant 0 : i32
    return %arg0, %c0_i32, %c0_i32_0 : i32, i32, i32
  }
  func.func @transform_1(%arg0: i32) -> (i32, i32) {
    %c0_i32 = arith.constant 0 : i32
    %c0_i32_0 = arith.constant 0 : i32
    %c0_i32_1 = arith.constant 0 : i32
    return %c0_i32, %c0_i32_0 : i32, i32
  }
  func.func @transform_2(%arg0: i32) -> (i32, i32) {
    %c0_i32 = arith.constant 0 : i32
    %c0_i32_0 = arith.constant 0 : i32
    %c0_i32_1 = arith.constant 0 : i32
    return %c0_i32, %c0_i32_0 : i32, i32
  }
  func.func @transform_3(%arg0: i32) -> (i32, i32) {
    %c0_i32 = arith.constant 0 : i32
    %c0_i32_0 = arith.constant 0 : i32
    %c0_i32_1 = arith.constant 0 : i32
    return %c0_i32, %c0_i32_0 : i32, i32
  }
  func.func @transform_4(%arg0: i32) -> (i32, i32) {
    %c0_i32 = arith.constant 0 : i32
    %c0_i32_0 = arith.constant 0 : i32
    %c0_i32_1 = arith.constant 0 : i32
    return %c0_i32, %c0_i32_0 : i32, i32
  }
  func.func @transform_5(%arg0: i32) -> (i32, i32) {
    %c0_i32 = arith.constant 0 : i32
    %c0_i32_0 = arith.constant 0 : i32
    %c0_i32_1 = arith.constant 0 : i32
    return %c0_i32, %c0_i32_0 : i32, i32
  }
}

</mosaic_0001>

<bundles_post_ra>
// kernel: lstm_encoder_forward.1
= control target key start
LH: loop header
LB: loop body
LE: loop exit
PB: predicated region body
PF: predicated region fallthrough
CT: control target
= control target key end

     0   :  { %s1704_s18 = smov 0   ;;  %s2202_s0 = inlined_call_operand.vmem [shape: f32[8,8,16], index: 0, kind: input, shape index: {}]   ;;  %s2203_s1 = inlined_call_operand.vmem [shape: f32[16,512], index: 1, kind: input, shape index: {}]   ;;  %s2204_s2 = inlined_call_operand.vmem [shape: f32[128,512], index: 2, kind: input, shape index: {}]   ;;  %s2205_s3 = inlined_call_operand.vmem [shape: f32[1,512], index: 3, kind: input, shape index: {}]   ;;  %s2206_s4 = inlined_call_operand.vmem [shape: f32[8,128], index: 4, kind: output, shape index: {0}]   ;;  %s2207_s5 = inlined_call_operand.vmem [shape: f32[8,128], index: 5, kind: output, shape index: {1}]  }
   0x1 LB: > { %s1710_s19 = sadd.s32 4294967295, %s1670_s18   ;;  %p1267_p0 = scmp.ge.s32.totalorder %s1670_s18, 1  ;;  %s1670_s18 = sphi %s1704_s18, %s16_s18  }
   0x2   : > { %p181_p1 = scmp.lt.s32.totalorder %s1670_s18, 3 }
   0x4   : > { %p182_p2 = pnand %p1267_p0, %p181_p1 }
   0x5   : > { %s1268_s20 = sshll.u32 (!%p182_p2), %s1710_s19, 2  ;;  %p1270_p4 = scmp.ne.s32.totalorder (!%p182_p2), %s1710_s19, 0 }
   0x6   : > { %185 = sbr.rel (%p182_p2) target bundleno = 1093 (0x445), region = 36  ;;  %p205_p3 = scmp.lt.s32.totalorder (!%p182_p2), %s1268_s20, 7 }
   0xd   : > { %s2209_s20 = smov (!%p205_p3, %s1268_s20), 7  ;;  %213 = sbr.rel (%p1270_p4) target bundleno = 20 (0x14), region = 40 }
   0xe   : > { %s1269_s21 = sshll.u32 %s2209_s20, 3  ;;  %v1672_v0 = vmov (!%p1270_p4), 0.0  }
   0xf   : > { %s1718_s24 = scalar_lea.vmem %s2202_s0, %s1269_s21  ;;  %214 = vst [vmem:[#allocation3] sm:$0xff] (!%p1270_p4), %v1672_v0  ;;  %215 = vst [vmem:[#allocation4] sm:$0xff] (!%p1270_p4), %v1672_v0 }
  0x14 PF: > { %v221_v1 = vld [vmem:[%s2203_s1 + $0x8] sm:$0xff]  ;;  %v223_v3 = vld [vmem:[%s2203_s1 + $0x18] sm:$0xff]  ;;  %v220_v6 = vld [vmem:[%s2203_s1] sm:$0xff]  ;;  %v1673_v8 = vmov 0.0   ;;  %vm250_vm0 = vcmask 130048   ;;  %p1291_p5 = scmp.ne.s32.totalorder %s1710_s19, 1 }
  0x15   : > { %v225_v2 = vld [vmem:[%s2203_s1 + $0x28] sm:$0xff]  ;;  %v227_v5 = vld [vmem:[%s2203_s1 + $0x38] sm:$0xff]  ;;  %v224_v7 = vld [vmem:[%s2203_s1 + $0x20] sm:$0xff]  ;;  %327 = vmatprep.mubr.f32.mxu0 %v1673_v8  ;;  %416 = vmatprep.mubr.f32.mxu1 %v1673_v8 }
  0x16   : > { %v1294_v4 = vpack.c.bf16 %v225_v2, %v221_v1  ;;  %v1298_v9 = vpack.c.bf16 %v227_v5, %v223_v3  ;;  %v1296_v10 = vpack.c.bf16 %v224_v7, %v220_v6  ;;  %v222_v11 = vld [vmem:[%s2203_s1 + $0x10] sm:$0xff]  ;;  %v458_v13 = vld [vmem:[%s2204_s2 + $0x8] sm:$0xff]  ;;  %v460_v16 = vld [vmem:[%s2204_s2 + $0x18] sm:$0xff] }
  0x17   : > { %v226_v12 = vld [vmem:[%s2203_s1 + $0x30] sm:$0xff]  ;;  %v462_v15 = vld [vmem:[%s2204_s2 + $0x28] sm:$0xff]  ;;  %v464_v17 = vld [vmem:[%s2204_s2 + $0x38] sm:$0xff] }
  0x18   : > { %1295 = vmatprep.subr.bf16.mxu0 %v1294_v4  ;;  %v1300_v14 = vpack.c.bf16 %v226_v12, %v222_v11  ;;  %1299 = vmatprep.subr.bf16.mxu1 %v1298_v9  ;;  %v1759_v18 = vpack.c.bf16 %v462_v15, %v458_v13  ;;  %v1761_v19 = vpack.c.bf16 %v464_v17, %v460_v16  ;;  %v216_v20 = vld [vmem:[%s1718_s24] sm:$0xff]  ;;  %v459_v24 = vld [vmem:[%s2204_s2 + $0x10] sm:$0xff]  ;;  %v466_v26 = vld [vmem:[%s2204_s2 + $0x48] sm:$0xff] }
  0x19   : > { %1297 = vmatpush1.bf16.msra.mxu0 %v1296_v10  ;;  %v457_v21 = vld [vmem:[%s2204_s2] sm:$0xff]  ;;  %v463_v25 = vld [vmem:[%s2204_s2 + $0x30] sm:$0xff]  ;;  %v470_v28 = vld [vmem:[%s2204_s2 + $0x68] sm:$0xff] }
  0x1a   : > { %v461_v22 = vld [vmem:[%s2204_s2 + $0x20] sm:$0xff]  ;;  %1301 = vmatpush1.bf16.msra.mxu1 %v1300_v14  ;;  %1303 = vmatprep.subr.bf16.mxu0 %v1759_v18  ;;  %v1783_v27 = vpack.c.bf16 %v463_v25, %v459_v24  ;;  %v468_v29 = vld [vmem:[%s2204_s2 + $0x58] sm:$0xff]  ;;  %v1795_v31 = vpack.c.bf16 %v470_v28, %v466_v26  ;;  %v467_v35 = vld [vmem:[%s2204_s2 + $0x50] sm:$0xff] }
  0x1b   : > { %v1770_v23 = vpack.c.bf16 %v461_v22, %v457_v21  ;;  %1335 = vmatprep.subr.bf16.mxu1 %v1761_v19  ;;  %v472_v30 = vld [vmem:[%s2204_s2 + $0x78] sm:$0xff]  ;;  %v465_v33 = vld [vmem:[%s2204_s2 + $0x40] sm:$0xff]  ;;  %v471_v37 = vld [vmem:[%s2204_s2 + $0x70] sm:$0xff] }
  0x1c   : > { %1271 = vmatmul.mubr.msk.f32.vlgmr.msra.gmra.mrb[0].mxu0 %vm250_vm0, %v216_v20  ;;  %v1797_v32 = vpack.c.bf16 %v472_v30, %v468_v29  ;;  %v469_v34 = vld [vmem:[%s2204_s2 + $0x60] sm:$0xff]  ;;  %v474_v38 = vld [vmem:[%s2204_s2 + $0x88] sm:$0xff]  ;;  %v1823_v40 = vpack.c.bf16 %v471_v37, %v467_v35  ;;  %v476_v42 = vld [vmem:[%s2204_s2 + $0x98] sm:$0xff] }
  0x1d   : > { %1275 = vmatmul.mubr.msk.f32.vlgmr.msra.gmra.mrb[0].mxu1 %vm250_vm0, %v216_v20  ;;  %1305 = vmatpush1.bf16.msra.mxu0 %v1770_v23  ;;  %v1810_v36 = vpack.c.bf16 %v469_v34, %v465_v33  ;;  %v478_v39 = vld [vmem:[%s2204_s2 + $0xa8] sm:$0xff]  ;;  %v480_v43 = vld [vmem:[%s2204_s2 + $0xb8] sm:$0xff]  ;;  %v473_v44 = vld [vmem:[%s2204_s2 + $0x80] sm:$0xff] }
  0x1e   : > { %1337 = vmatpush1.bf16.msra.mxu1 %v1783_v27  ;;  %1307 = vmatprep.subr.bf16.mxu0 %v1795_v31  ;;  %v1825_v41 = vpack.c.bf16 %v478_v39, %v474_v38  ;;  %v1837_v45 = vpack.c.bf16 %v480_v43, %v476_v42  ;;  %v477_v46 = vld [vmem:[%s2204_s2 + $0xa0] sm:$0xff]  ;;  %v475_v47 = vld [vmem:[%s2204_s2 + $0x90] sm:$0xff]  ;;  %v482_v49 = vld [vmem:[%s2204_s2 + $0xc8] sm:$0xff] }
  0x1f   : > { %1339 = vmatprep.subr.bf16.mxu1 %v1797_v32  ;;  %v479_v48 = vld [vmem:[%s2204_s2 + $0xb0] sm:$0xff]  ;;  %333 = vmatprep.mubr.f32.mxu0 %v1673_v8  ;;  %v486_v50 = vld [vmem:[%s2204_s2 + $0xe8] sm:$0xff]  ;;  %v484_v51 = vld [vmem:[%s2204_s2 + $0xd8] sm:$0xff]  ;;  %v1860_v52 = vpack.c.bf16 %v477_v46, %v473_v44 }
  0x20   : > { %422 = vmatprep.mubr.f32.mxu1 %v1673_v8  ;;  %v488_v53 = vld [vmem:[%s2204_s2 + $0xf8] sm:$0xff]  ;;  %v1867_v54 = vpack.c.bf16 %v479_v48, %v475_v47  ;;  %v1869_v55 = vpack.c.bf16 %v486_v50, %v482_v49  ;;  %v481_v56 = vld [vmem:[%s2204_s2 + $0xc0] sm:$0xff]  ;;  %v483_v58 = vld [vmem:[%s2204_s2 + $0xd0] sm:$0xff] }
  0x21   : > { %1309 = vmatpush1.bf16.msra.mxu0 %v1810_v36  ;;  %v485_v57 = vld [vmem:[%s2204_s2 + $0xe0] sm:$0xff]  ;;  %v1881_v59 = vpack.c.bf16 %v488_v53, %v484_v51  ;;  %v487_v60 = vld [vmem:[%s2204_s2 + $0xf0] sm:$0xff]  ;;  %v490_v61 = vld [vmem:[%s2204_s2 + $0x108] sm:$0xff] }
  0x22   : > { %1341 = vmatpush1.bf16.msra.mxu1 %v1823_v40  ;;  %1311 = vmatprep.subr.bf16.mxu0 %v1825_v41  ;;  %v494_v62 = vld [vmem:[%s2204_s2 + $0x128] sm:$0xff]  ;;  %v492_v63 = vld [vmem:[%s2204_s2 + $0x118] sm:$0xff]  ;;  %v1899_v1 = vpack.c.bf16 %v485_v57, %v481_v56  ;;  %v1904_v3 = vpack.c.bf16 %v487_v60, %v483_v58  ;;  %v489_v5 = vld [vmem:[%s2204_s2 + $0x100] sm:$0xff] }
  0x23   : > { %1343 = vmatprep.subr.bf16.mxu1 %v1837_v45  ;;  %v496_v0 = vld [vmem:[%s2204_s2 + $0x138] sm:$0xff]  ;;  %v217_v2 = vld [vmem:[%s1718_s24 + $0x8] sm:$0xff]  ;;  %v1906_v4 = vpack.c.bf16 %v494_v62, %v490_v61  ;;  %v493_v6 = vld [vmem:[%s2204_s2 + $0x120] sm:$0xff] }
  0x24   : > { %v491_v7 = vld [vmem:[%s2204_s2 + $0x110] sm:$0xff]  ;;  %v1918_v9 = vpack.c.bf16 %v496_v0, %v492_v63  ;;  %1272 = vmatmul.mubr.msk.f32.gmra.mrb[2].mxu0 %vm250_vm0, %v217_v2  ;;  %v498_v11 = vld [vmem:[%s2204_s2 + $0x148] sm:$0xff]  ;;  %1276 = vmatmul.mubr.msk.f32.gmra.mrb[2].mxu1 %vm250_vm0, %v217_v2  ;;  %v500_v13 = vld [vmem:[%s2204_s2 + $0x158] sm:$0xff]  ;;  %v1940_v16 = vpack.c.bf16 %v493_v6, %v489_v5  ;;  %v230_v5 = vlaneseq }
  0x25   : > { %1313 = vmatpush1.bf16.msra.mxu0 %v1860_v52  ;;  %v495_v10 = vld [vmem:[%s2204_s2 + $0x130] sm:$0xff]  ;;  %v502_v12 = vld [vmem:[%s2204_s2 + $0x168] sm:$0xff]  ;;  %v504_v14 = vld [vmem:[%s2204_s2 + $0x178] sm:$0xff]  ;;  %339 = vmatprep.mubr.f32.mxu0 %v1673_v8 }
  0x26   : > { %1345 = vmatpush1.bf16.msra.mxu1 %v1867_v54  ;;  %1315 = vmatprep.subr.bf16.mxu0 %v1869_v55  ;;  %v218_v15 = vld [vmem:[%s1718_s24 + $0x10] sm:$0xff]  ;;  %v1945_v17 = vpack.c.bf16 %v495_v10, %v491_v7  ;;  %v1947_v20 = vpack.c.bf16 %v502_v12, %v498_v11  ;;  %v497_v21 = vld [vmem:[%s2204_s2 + $0x140] sm:$0xff]  ;;  %v1959_v25 = vpack.c.bf16 %v504_v14, %v500_v13  ;;  %v506_v28 = vld [vmem:[%s2204_s2 + $0x188] sm:$0xff]  ;;  %v231_v6 = vshrl.u32 %v230_v5, 7 }
  0x27   : > { %1347 = vmatprep.subr.bf16.mxu1 %v1881_v59  ;;  %428 = vmatprep.mubr.f32.mxu1 %v1673_v8  ;;  %v501_v22 = vld [vmem:[%s2204_s2 + $0x160] sm:$0xff]  ;;  %v499_v24 = vld [vmem:[%s2204_s2 + $0x150] sm:$0xff]  ;;  %v510_v29 = vld [vmem:[%s2204_s2 + $0x1a8] sm:$0xff] }
  0x28   : > { %v503_v26 = vld [vmem:[%s2204_s2 + $0x170] sm:$0xff]  ;;  %1273 = vmatmul.mubr.msk.f32.gmra.mrb[4].mxu0 %vm250_vm0, %v218_v15  ;;  %1277 = vmatmul.mubr.msk.f32.gmra.mrb[4].mxu1 %vm250_vm0, %v218_v15  ;;  %v508_v30 = vld [vmem:[%s2204_s2 + $0x198] sm:$0xff]  ;;  %v1981_v35 = vpack.c.bf16 %v501_v22, %v497_v21  ;;  %v1988_v38 = vpack.c.bf16 %v510_v29, %v506_v28  ;;  %v505_v39 = vld [vmem:[%s2204_s2 + $0x180] sm:$0xff]  ;;  %v232_v7 = vsub.s32 0, %v231_v6  ;;  %v236_v11 = vsub.s32 1, %v231_v6 }
  0x29   : > { %1317 = vmatpush1.bf16.msra.mxu0 %v1899_v1  ;;  %v512_v33 = vld [vmem:[%s2204_s2 + $0x1b8] sm:$0xff]  ;;  %345 = vmatprep.mubr.f32.mxu0 %v1673_v8  ;;  %v1986_v37 = vpack.c.bf16 %v503_v26, %v499_v24  ;;  %v509_v42 = vld [vmem:[%s2204_s2 + $0x1a0] sm:$0xff]  ;;  %v507_v43 = vld [vmem:[%s2204_s2 + $0x190] sm:$0xff]  ;;  %v244_v15 = vsub.s32 3, %v231_v6 }
  0x2a   : > { %1349 = vmatpush1.bf16.msra.mxu1 %v1904_v3  ;;  %1319 = vmatprep.subr.bf16.mxu0 %v1906_v4  ;;  %v219_v34 = vld [vmem:[%s1718_s24 + $0x18] sm:$0xff]  ;;  %v2000_v44 = vpack.c.bf16 %v512_v33, %v508_v30  ;;  %v511_v46 = vld [vmem:[%s2204_s2 + $0x1b0] sm:$0xff]  ;;  %v514_v47 = vld [vmem:[%s2204_s2 + $0x1c8] sm:$0xff]  ;;  %v2021_v51 = vpack.c.bf16 %v509_v42, %v505_v39 }
  0x2b   : > { %1351 = vmatprep.subr.bf16.mxu1 %v1918_v9  ;;  %434 = vmatprep.mubr.f32.mxu1 %v1673_v8  ;;  %v518_v48 = vld [vmem:[%s2204_s2 + $0x1e8] sm:$0xff]  ;;  %v516_v49 = vld [vmem:[%s2204_s2 + $0x1d8] sm:$0xff]  ;;  %v2026_v53 = vpack.c.bf16 %v511_v46, %v507_v43  ;;  %v513_v57 = vld [vmem:[%s2204_s2 + $0x1c0] sm:$0xff] }
  0x2c   : > { %1274 = vmatmul.mubr.msk.f32.gmra.mrb[6].mxu0 %vm250_vm0, %v219_v34  ;;  %1278 = vmatmul.mubr.msk.f32.gmra.mrb[6].mxu1 %vm250_vm0, %v219_v34  ;;  %v520_v50 = vld [vmem:[%s2204_s2 + $0x1f8] sm:$0xff]  ;;  %v2028_v56 = vpack.c.bf16 %v518_v48, %v514_v47  ;;  %v517_v58 = vld [vmem:[%s2204_s2 + $0x1e0] sm:$0xff]  ;;  %v515_v61 = vld [vmem:[%s2204_s2 + $0x1d0] sm:$0xff]  ;;  %v240_v34 = vsub.s32 2, %v231_v6 }
  0x2d   : > { %1321 = vmatpush1.bf16.msra.mxu0 %v1940_v16  ;;  %591 = vmatprep.mubr.f32.mxu0 %v1673_v8  ;;  %v2037_v60 = vpack.c.bf16 %v520_v50, %v516_v49  ;;  %v519_v62 = vld [vmem:[%s2204_s2 + $0x1f0] sm:$0xff]  ;;  %v2046_v63 = vpack.c.bf16 %v517_v58, %v513_v57  ;;  %v521_v2 = vld [vmem:[#allocation3] sm:$0xff] }
  0x2e   : > { %1353 = vmatpush1.bf16.msra.mxu1 %v1945_v17  ;;  %1323 = vmatprep.subr.bf16.mxu0 %v1947_v20  ;;  %v2050_v0 = vpack.c.bf16 %v519_v62, %v515_v61  ;;  %v228_v10 = vld [vmem:[%s2205_s3] sm:$0xf]  ;;  %v522_v61 = vld [vmem:[#allocation4] sm:$0xff] }
  0x2f   : > { %1355 = vmatprep.subr.bf16.mxu1 %v1959_v25  ;;  %662 = vmatprep.mubr.f32.mxu1 %v1673_v8  ;;  %v2094_v12 = vrot.slane %v228_v10, %v232_v7  ;;  %v2096_v13 = vrot.slane %v228_v10, %v236_v11  ;;  %v2100_v33 = vrot.slane %v228_v10, %v244_v15 }
  0x30   : > { %v2103_v42 = vrot.slane %v228_v10, %v240_v34 }
  0x31   : > { %1325 = vmatpush1.bf16.msra.mxu0 %v1981_v35 }
  0x32   : > { %1357 = vmatpush1.bf16.msra.mxu1 %v1986_v37  ;;  %1327 = vmatprep.subr.bf16.mxu0 %v1988_v38 }
  0x33   : > { %1359 = vmatprep.subr.bf16.mxu1 %v2000_v44 }
  0x35   : > { %1329 = vmatpush1.bf16.msra.mxu0 %v2021_v51 }
  0x36   : > { %1361 = vmatpush1.bf16.msra.mxu1 %v2026_v53  ;;  %1331 = vmatprep.subr.bf16.mxu0 %v2028_v56 }
  0x37   : > { %1363 = vmatprep.subr.bf16.mxu1 %v2037_v60 }
  0x39   : > { %1333 = vmatpush1.bf16.msra.mxu0 %v2046_v63 }
  0x3a   : > { %1365 = vmatpush1.bf16.msra.mxu1 %v2050_v0  ;;  %1367 = vmatprep.subr.bf16.mxu0 %v1759_v18 }
  0x3b   : > { %1399 = vmatprep.subr.bf16.mxu1 %v1761_v19 }
  0x3c   : > { %592 = vmatmul.mubr.f32.vlgmr.msra.gmra.mrb[0].mxu0 %v521_v2 }
  0x3d   : > { %663 = vmatmul.mubr.f32.vlgmr.msra.gmra.mrb[0].mxu1 %v521_v2  ;;  %1369 = vmatpush1.bf16.msra.mxu0 %v1770_v23 }
  0x3e   : > { %1401 = vmatpush1.bf16.msra.mxu1 %v1783_v27  ;;  %1371 = vmatprep.subr.bf16.mxu0 %v1795_v31 }
  0x3f   : > { %1403 = vmatprep.subr.bf16.mxu1 %v1797_v32  ;;  %766 = vmatprep.mubr.f32.mxu0 %v1673_v8 }
  0x40   : > { %837 = vmatprep.mubr.f32.mxu1 %v1673_v8 }
  0x41   : > { %1373 = vmatpush1.bf16.msra.mxu0 %v1810_v36 }
  0x42   : > { %1405 = vmatpush1.bf16.msra.mxu1 %v1823_v40  ;;  %1375 = vmatprep.subr.bf16.mxu0 %v1825_v41 }
  0x43   : > { %1407 = vmatprep.subr.bf16.mxu1 %v1837_v45 }
  0x45   : > { %1377 = vmatpush1.bf16.msra.mxu0 %v1860_v52 }
  0x46   : > { %1409 = vmatpush1.bf16.msra.mxu1 %v1867_v54  ;;  %1379 = vmatprep.subr.bf16.mxu0 %v1869_v55 }
  0x47   : > { %1411 = vmatprep.subr.bf16.mxu1 %v1881_v59 }
  0x49   : > { %1381 = vmatpush1.bf16.msra.mxu0 %v1899_v1 }
  0x4a   : > { %1413 = vmatpush1.bf16.msra.mxu1 %v1904_v3  ;;  %1383 = vmatprep.subr.bf16.mxu0 %v1906_v4 }
  0x4b   : > { %1415 = vmatprep.subr.bf16.mxu1 %v1918_v9 }
  0x4d   : > { %1385 = vmatpush1.bf16.msra.mxu0 %v1940_v16 }
  0x4e   : > { %1417 = vmatpush1.bf16.msra.mxu1 %v1945_v17  ;;  %1387 = vmatprep.subr.bf16.mxu0 %v1947_v20 }
  0x4f   : > { %1419 = vmatprep.subr.bf16.mxu1 %v1959_v25 }
  0x51   : > { %1389 = vmatpush1.bf16.msra.mxu0 %v1981_v35 }
  0x52   : > { %1421 = vmatpush1.bf16.msra.mxu1 %v1986_v37  ;;  %1391 = vmatprep.subr.bf16.mxu0 %v1988_v38 }
  0x53   : > { %1423 = vmatprep.subr.bf16.mxu1 %v2000_v44 }
  0x55   : > { %1393 = vmatpush1.bf16.msra.mxu0 %v2021_v51 }
  0x56   : > { %1425 = vmatpush1.bf16.msra.mxu1 %v2026_v53  ;;  %1395 = vmatprep.subr.bf16.mxu0 %v2028_v56 }
  0x57   : > { %1427 = vmatprep.subr.bf16.mxu1 %v2037_v60 }
  0x59   : > { %1397 = vmatpush1.bf16.msra.mxu0 %v2046_v63 }
  0x5a   : > { %1429 = vmatpush1.bf16.msra.mxu1 %v2050_v0  ;;  %1431 = vmatprep.subr.bf16.mxu0 %v1759_v18 }
  0x5b   : > { %1463 = vmatprep.subr.bf16.mxu1 %v1761_v19 }
 0x10f   : > { %v593_v14 = vpop.f32.mrb[0].mxu0 }
 0x110   : > { %v1558_v21 = vadd.f32 %v593_v14, %v2094_v12  ;;  %v664_v22 = vpop.f32.mrb[0].mxu1  ;;  %v595_v24 = vpop.f32.mrb[1].mxu0 }
 0x111   : > { %v1559_v26 = vadd.f32 %v595_v24, %v2096_v13  ;;  %v666_v28 = vpop.f32.mrb[1].mxu1  ;;  %v1566_v46 = vadd.f32 %v664_v22, %v2103_v42 }
 0x112   : > { %v1279_v29 = vmul.f32 -1.442695, %v1558_v21  ;;  %v1567_v39 = vadd.f32 %v666_v28, %v2100_v33 }
 0x113   : > { %v1280_v30 = vmul.f32 -1.442695, %v1559_v26 }
 0x114   : > { %1600 = vpow2.f32 %v1279_v29  ;;  %v1281_v43 = vmul.f32 -1.442695, %v1567_v39 }
 0x115   : > { %1602 = vpow2.f32 %v1280_v30 }
 0x116   : > { %1604 = vpow2.f32 %v1281_v43 }
 0x117   : > { %1606 = vtanh.f32 %v1566_v46 }
 0x11e   : > { %v1601_v47 = vpop.eup %1600 }
 0x11f   : > { %v1603_v48 = vpop.eup %1602  ;;  %v676_v49 = vadd.f32 1.0, %v1601_v47 }
 0x120   : > { %v682_v50 = vadd.f32 1.0, %v1603_v48  ;;  %v1605_v57 = vpop.eup %1604 }
 0x121   : > { %1608 = vrcp.f32 %v676_v49  ;;  %v1607_v58 = vpop.eup %1606  ;;  %v689_v6 = vadd.f32 1.0, %v1605_v57 }
 0x122   : > { %1610 = vrcp.f32 %v682_v50 }
 0x123   : > { %1612 = vrcp.f32 %v689_v6 }
 0x12b   : > { %v1609_v62 = vpop.eup %1608 }
 0x12c   : > { %v1611_v2 = vpop.eup %1610  ;;  %v693_v5 = vmul.f32 %v1609_v62, %v1607_v58 }
 0x12d   : > { %v692_v7 = vmul.f32 %v1611_v2, %v522_v61  ;;  %v1613_v11 = vpop.eup %1612 }
 0x12f   : > { %v2106_v10 = vadd.f32 %v693_v5, %v692_v7 }
 0x131   : > { %1614 = vtanh.f32 %v2106_v10 }
 0x13b   : > { %v1615_v14 = vpop.eup %1614 }
 0x13c   : > { %v696_v15 = vmul.f32 %v1615_v14, %v1613_v11 }
 0x13e   : > { %767 = vmatmul.mubr.f32.vlgmr.msra.gmra.mrb[2].mxu0 %v696_v15  ;;  %838 = vmatmul.mubr.f32.vlgmr.msra.gmra.mrb[2].mxu1 %v696_v15 }
 0x13f   : > { %1433 = vmatpush1.bf16.msra.mxu0 %v1770_v23  ;;  %1465 = vmatpush1.bf16.msra.mxu1 %v1783_v27 }
 0x140   : > { %1435 = vmatprep.subr.bf16.mxu0 %v1795_v31  ;;  %1467 = vmatprep.subr.bf16.mxu1 %v1797_v32 }
 0x141   : > { %941 = vmatprep.mubr.f32.mxu0 %v1673_v8  ;;  %1012 = vmatprep.mubr.f32.mxu1 %v1673_v8 }
 0x143   : > { %1437 = vmatpush1.bf16.msra.mxu0 %v1810_v36  ;;  %1469 = vmatpush1.bf16.msra.mxu1 %v1823_v40 }
 0x144   : > { %1439 = vmatprep.subr.bf16.mxu0 %v1825_v41  ;;  %1471 = vmatprep.subr.bf16.mxu1 %v1837_v45 }
 0x147   : > { %1441 = vmatpush1.bf16.msra.mxu0 %v1860_v52  ;;  %1473 = vmatpush1.bf16.msra.mxu1 %v1867_v54 }
 0x148   : > { %1443 = vmatprep.subr.bf16.mxu0 %v1869_v55  ;;  %1475 = vmatprep.subr.bf16.mxu1 %v1881_v59 }
 0x14b   : > { %1445 = vmatpush1.bf16.msra.mxu0 %v1899_v1  ;;  %1477 = vmatpush1.bf16.msra.mxu1 %v1904_v3 }
 0x14c   : > { %1447 = vmatprep.subr.bf16.mxu0 %v1906_v4  ;;  %1479 = vmatprep.subr.bf16.mxu1 %v1918_v9 }
 0x14f   : > { %1449 = vmatpush1.bf16.msra.mxu0 %v1940_v16  ;;  %1481 = vmatpush1.bf16.msra.mxu1 %v1945_v17 }
 0x150   : > { %1451 = vmatprep.subr.bf16.mxu0 %v1947_v20  ;;  %1483 = vmatprep.subr.bf16.mxu1 %v1959_v25 }
 0x153   : > { %1453 = vmatpush1.bf16.msra.mxu0 %v1981_v35  ;;  %1485 = vmatpush1.bf16.msra.mxu1 %v1986_v37 }
 0x154   : > { %1455 = vmatprep.subr.bf16.mxu0 %v1988_v38  ;;  %1487 = vmatprep.subr.bf16.mxu1 %v2000_v44 }
 0x157   : > { %1457 = vmatpush1.bf16.msra.mxu0 %v2021_v51  ;;  %1489 = vmatpush1.bf16.msra.mxu1 %v2026_v53 }
 0x158   : > { %1459 = vmatprep.subr.bf16.mxu0 %v2028_v56  ;;  %1491 = vmatprep.subr.bf16.mxu1 %v2037_v60 }
 0x15b   : > { %1461 = vmatpush1.bf16.msra.mxu0 %v2046_v63  ;;  %1493 = vmatpush1.bf16.msra.mxu1 %v2050_v0 }
 0x15c   : > { %1495 = vmatprep.subr.bf16.mxu0 %v1759_v18  ;;  %1527 = vmatprep.subr.bf16.mxu1 %v1761_v19 }
 0x211   : > { %v768_v21 = vpop.f32.mrb[2].mxu0  ;;  %v839_v22 = vpop.f32.mrb[2].mxu1 }
 0x212   : > { %v1560_v24 = vadd.f32 %v768_v21, %v2094_v12  ;;  %v770_v26 = vpop.f32.mrb[3].mxu0  ;;  %v841_v28 = vpop.f32.mrb[3].mxu1  ;;  %v1568_v46 = vadd.f32 %v839_v22, %v2103_v42 }
 0x213   : > { %v1561_v29 = vadd.f32 %v770_v26, %v2096_v13  ;;  %v1569_v39 = vadd.f32 %v841_v28, %v2100_v33 }
 0x214   : > { %v1282_v30 = vmul.f32 -1.442695, %v1560_v24 }
 0x215   : > { %v1283_v34 = vmul.f32 -1.442695, %v1561_v29  ;;  %v1284_v43 = vmul.f32 -1.442695, %v1569_v39 }
 0x216   : > { %1616 = vpow2.f32 %v1282_v30 }
 0x217   : > { %1618 = vpow2.f32 %v1283_v34 }
 0x218   : > { %1620 = vpow2.f32 %v1284_v43 }
 0x219   : > { %1622 = vtanh.f32 %v1568_v46 }
 0x220   : > { %v1617_v18 = vpop.eup %1616 }
 0x221   : > { %v1619_v47 = vpop.eup %1618  ;;  %v851_v19 = vadd.f32 1.0, %v1617_v18 }
 0x222   : > { %v857_v48 = vadd.f32 1.0, %v1619_v47  ;;  %v1621_v49 = vpop.eup %1620 }
 0x223   : > { %1624 = vrcp.f32 %v851_v19  ;;  %v1623_v50 = vpop.eup %1622  ;;  %v864_v62 = vadd.f32 1.0, %v1621_v49 }
 0x224   : > { %1626 = vrcp.f32 %v857_v48 }
 0x225   : > { %1628 = vrcp.f32 %v864_v62 }
 0x22d   : > { %v1625_v57 = vpop.eup %1624 }
 0x22e   : > { %v1627_v58 = vpop.eup %1626  ;;  %v868_v61 = vmul.f32 %v1625_v57, %v1623_v50 }
 0x22f   : > { %v867_v2 = vmul.f32 %v1627_v58, %v2106_v10  ;;  %v1629_v6 = vpop.eup %1628 }
 0x231   : > { %v2148_v5 = vadd.f32 %v868_v61, %v867_v2 }
 0x233   : > { %1630 = vtanh.f32 %v2148_v5 }
 0x23d   : > { %v1631_v7 = vpop.eup %1630 }
 0x23e   : > { %v871_v11 = vmul.f32 %v1631_v7, %v1629_v6 }
 0x240   : > { %942 = vmatmul.mubr.f32.vlgmr.msra.gmra.mrb[4].mxu0 %v871_v11  ;;  %1013 = vmatmul.mubr.f32.vlgmr.msra.gmra.mrb[4].mxu1 %v871_v11 }
 0x241   : > { %1497 = vmatpush1.bf16.msra.mxu0 %v1770_v23  ;;  %1529 = vmatpush1.bf16.msra.mxu1 %v1783_v27 }
 0x242   : > { %1499 = vmatprep.subr.bf16.mxu0 %v1795_v31  ;;  %1531 = vmatprep.subr.bf16.mxu1 %v1797_v32 }
 0x243   : > { %1116 = vmatprep.mubr.f32.mxu0 %v1673_v8  ;;  %1187 = vmatprep.mubr.f32.mxu1 %v1673_v8 }
 0x245   : > { %1501 = vmatpush1.bf16.msra.mxu0 %v1810_v36  ;;  %1533 = vmatpush1.bf16.msra.mxu1 %v1823_v40 }
 0x246   : > { %1503 = vmatprep.subr.bf16.mxu0 %v1825_v41  ;;  %1535 = vmatprep.subr.bf16.mxu1 %v1837_v45 }
 0x249   : > { %1505 = vmatpush1.bf16.msra.mxu0 %v1860_v52  ;;  %1537 = vmatpush1.bf16.msra.mxu1 %v1867_v54 }
 0x24a   : > { %1507 = vmatprep.subr.bf16.mxu0 %v1869_v55  ;;  %1539 = vmatprep.subr.bf16.mxu1 %v1881_v59 }
 0x24d   : > { %1509 = vmatpush1.bf16.msra.mxu0 %v1899_v1  ;;  %1541 = vmatpush1.bf16.msra.mxu1 %v1904_v3 }
 0x24e   : > { %1511 = vmatprep.subr.bf16.mxu0 %v1906_v4  ;;  %1543 = vmatprep.subr.bf16.mxu1 %v1918_v9 }
 0x251   : > { %1513 = vmatpush1.bf16.msra.mxu0 %v1940_v16  ;;  %1545 = vmatpush1.bf16.msra.mxu1 %v1945_v17 }
 0x252   : > { %1515 = vmatprep.subr.bf16.mxu0 %v1947_v20  ;;  %1547 = vmatprep.subr.bf16.mxu1 %v1959_v25 }
 0x255   : > { %1517 = vmatpush1.bf16.msra.mxu0 %v1981_v35  ;;  %1549 = vmatpush1.bf16.msra.mxu1 %v1986_v37 }
 0x256   : > { %1519 = vmatprep.subr.bf16.mxu0 %v1988_v38  ;;  %1551 = vmatprep.subr.bf16.mxu1 %v2000_v44 }
 0x259   : > { %1521 = vmatpush1.bf16.msra.mxu0 %v2021_v51  ;;  %1553 = vmatpush1.bf16.msra.mxu1 %v2026_v53 }
 0x25a   : > { %1523 = vmatprep.subr.bf16.mxu0 %v2028_v56  ;;  %1555 = vmatprep.subr.bf16.mxu1 %v2037_v60 }
 0x25d   : > { %1525 = vmatpush1.bf16.msra.mxu0 %v2046_v63  ;;  %1557 = vmatpush1.bf16.msra.mxu1 %v2050_v0 }
 0x313   : > { %v943_v8 = vpop.f32.mrb[4].mxu0  ;;  %v1014_v23 = vpop.f32.mrb[4].mxu1 }
 0x314   : > { %v1562_v27 = vadd.f32 %v943_v8, %v2094_v12  ;;  %v945_v31 = vpop.f32.mrb[5].mxu0  ;;  %v1016_v32 = vpop.f32.mrb[5].mxu1  ;;  %v1570_v54 = vadd.f32 %v1014_v23, %v2103_v42 }
 0x315   : > { %v1563_v36 = vadd.f32 %v945_v31, %v2096_v13  ;;  %v1571_v45 = vadd.f32 %v1016_v32, %v2100_v33 }
 0x316   : > { %v1285_v40 = vmul.f32 -1.442695, %v1562_v27 }
 0x317   : > { %v1286_v41 = vmul.f32 -1.442695, %v1563_v36  ;;  %v1287_v52 = vmul.f32 -1.442695, %v1571_v45 }
 0x318   : > { %1632 = vpow2.f32 %v1285_v40 }
 0x319   : > { %1634 = vpow2.f32 %v1286_v41 }
 0x31a   : > { %1636 = vpow2.f32 %v1287_v52 }
 0x31b   : > { %1638 = vtanh.f32 %v1570_v54 }
 0x322   : > { %v1633_v55 = vpop.eup %1632 }
 0x323   : > { %v1635_v59 = vpop.eup %1634  ;;  %v1026_v1 = vadd.f32 1.0, %v1633_v55 }
 0x324   : > { %v1032_v3 = vadd.f32 1.0, %v1635_v59  ;;  %v1637_v4 = vpop.eup %1636 }
 0x325   : > { %1640 = vrcp.f32 %v1026_v1  ;;  %v1639_v9 = vpop.eup %1638  ;;  %v1039_v25 = vadd.f32 1.0, %v1637_v4 }
 0x326   : > { %1642 = vrcp.f32 %v1032_v3 }
 0x327   : > { %1644 = vrcp.f32 %v1039_v25 }
 0x32f   : > { %v1641_v16 = vpop.eup %1640 }
 0x330   : > { %v1643_v17 = vpop.eup %1642  ;;  %v1043_v20 = vmul.f32 %v1641_v16, %v1639_v9 }
 0x331   : > { %v1042_v35 = vmul.f32 %v1643_v17, %v2148_v5  ;;  %v1645_v38 = vpop.eup %1644 }
 0x333   : > { %v1044_v37 = vadd.f32 %v1043_v20, %v1042_v35 }
 0x335   : > { %1646 = vtanh.f32 %v1044_v37 }
 0x33f   : > { %v1647_v44 = vpop.eup %1646 }
 0x340   : > { %v1046_v51 = vmul.f32 %v1647_v44, %v1645_v38 }
 0x342   : > { %1117 = vmatmul.mubr.f32.vlgmr.msra.gmra.mrb[6].mxu0 %v1046_v51  ;;  %1188 = vmatmul.mubr.f32.vlgmr.msra.gmra.mrb[6].mxu1 %v1046_v51 }
 0x415   : > { %v1118_v53 = vpop.f32.mrb[6].mxu0  ;;  %v1189_v56 = vpop.f32.mrb[6].mxu1 }
 0x416   : > { %v1564_v60 = vadd.f32 %v1118_v53, %v2094_v12  ;;  %v1120_v63 = vpop.f32.mrb[7].mxu0  ;;  %v1191_v0 = vpop.f32.mrb[7].mxu1  ;;  %v1572_v24 = vadd.f32 %v1189_v56, %v2103_v42 }
 0x417   : > { %v1565_v10 = vadd.f32 %v1120_v63, %v2096_v13  ;;  %v1573_v21 = vadd.f32 %v1191_v0, %v2100_v33 }
 0x418   : > { %v1288_v14 = vmul.f32 -1.442695, %v1564_v60 }
 0x419   : > { %v1289_v15 = vmul.f32 -1.442695, %v1565_v10  ;;  %v1290_v22 = vmul.f32 -1.442695, %v1573_v21 }
 0x41a   : > { %1648 = vpow2.f32 %v1288_v14 }
 0x41b   : > { %1650 = vpow2.f32 %v1289_v15 }
 0x41c   : > { %1652 = vpow2.f32 %v1290_v22 }
 0x41d   : > { %1654 = vtanh.f32 %v1572_v24 }
 0x424   : > { %v1649_v26 = vpop.eup %1648 }
 0x425   : > { %v1651_v28 = vpop.eup %1650  ;;  %v1201_v29 = vadd.f32 1.0, %v1649_v26 }
 0x426   : > { %v1207_v30 = vadd.f32 1.0, %v1651_v28  ;;  %v1653_v12 = vpop.eup %1652 }
 0x427   : > { %1656 = vrcp.f32 %v1201_v29  ;;  %v1655_v34 = vpop.eup %1654  ;;  %v1214_v46 = vadd.f32 1.0, %v1653_v12 }
 0x428   : > { %1658 = vrcp.f32 %v1207_v30 }
 0x429   : > { %1660 = vrcp.f32 %v1214_v46 }
 0x431   : > { %v1657_v13 = vpop.eup %1656 }
 0x432   : > { %v1659_v39 = vpop.eup %1658  ;;  %v1218_v43 = vmul.f32 %v1657_v13, %v1655_v34 }
 0x433   : > { %v1217_v18 = vmul.f32 %v1659_v39, %v1044_v37  ;;  %v1661_v33 = vpop.eup %1660 }
 0x435   : > { %v1219_v47 = vadd.f32 %v1218_v43, %v1217_v18 }
 0x437   : > { %1662 = vtanh.f32 %v1219_v47  ;;  %1223 = vst [vmem:[#allocation4] sm:$0xff] %v1219_v47  ;;  %1229 = vst [vmem:[%s2207_s5] sm:$0xff] (!%p1291_p5), %v1219_v47 }
 0x43e   : > { %1227 = sbr.rel (%p1291_p5) target bundleno = 1093 (0x445), region = 44 }
 0x441   : > { %v1663_v42 = vpop.eup %1662 }
 0x442   : > { %v1221_v19 = vmul.f32 %v1663_v42, %v1661_v33 }
 0x444   : > { %1222 = vst [vmem:[#allocation3] sm:$0xff] %v1221_v19  ;;  %1228 = vst [vmem:[%s2206_s4] sm:$0xff] (!%p1291_p5), %v1221_v19 }
 0x445 PF: > { %s16_s18 = sadd.s32 1, %s1670_s18  }
 0x446   : > { %p13_p6 = scmp.ge.s32.totalorder %s16_s18, 4  }
 0x448   :  { %15 = sbr.rel (!%p13_p6) target bundleno = 1 (0x1), region = 81 }

</bundles_post_ra>
